<compile_context>
chip_gen: v6e
topology: v6e:2x2x1
jax: 0.10.0
libtpu: 0.0.40
codegen_flags: <defaults>
</compile_context>

<pallas_src>
import math
import random

import numpy as np
import jax
import jax.numpy as jnp
from jax.experimental import pallas as pl
from jax.experimental.pallas import tpu as pltpu

_POS_INF_BITS = 0x7F800000      # bit pattern of +inf; > any finite |score| pattern
_NEG_INF = float("-inf")


def _tpu_tuning():
    """(vmem_limit_bytes, vmem_budget_bytes, exp_dtype) for the local TPU gen."""
    try:
        kind = jax.devices()[0].device_kind.lower()
    except Exception:
        kind = ""
    big_vmem = any(t in kind for t in ("v4", "v5", "v6"))     # 128 MiB VMEM chips
    if big_vmem:
        vmem_limit, vmem_budget = 100 * 1024 * 1024, 80 * 1024 * 1024
    else:
        # Unknown / v7x-class: 64 MiB physical VMEM per TensorCore -> conservative.
        vmem_limit, vmem_budget = 56 * 1024 * 1024, 40 * 1024 * 1024
    # bf16 VPU/EUP exists on v6e and later; keep f32 math on v5e and older.
    use_bf16_exp = ("v6" in kind) or ("v7" in kind) or ("7x" in kind) or (not big_vmem)
    exp_dtype = jnp.bfloat16 if use_bf16_exp else jnp.float32
    return vmem_limit, vmem_budget, exp_dtype


def _pick_tq(L, E, D, has_mask, need_quantile, budget_bytes):
    """Largest query tile that divides L and keeps the per-step VMEM footprint
    (double-buffered blocks + co-live f32 (TQ, L) temporaries) inside budget."""
    if L <= 512:
        return L

    def footprint(tq):
        kv = 2 * (L * (E + D) * 2)               # K + V blocks (bf16), double-buffered
        qo = 2 * tq * E * 2 + 2 * tq * D * 4     # q tile + out tile
        bounds = 2 * 2 * tq * 4 * 128            # lo/hi tiles (lane padded)
        mask = 2 * tq * L if has_mask else 0     # int8 mask tile
        n_tmp = 6 if need_quantile else 4        # co-live f32 (TQ, L) temporaries
        return kv + qo + bounds + mask + n_tmp * tq * L * 4

    for tq in (512, 256, 128, 64, 32):
        if L % tq == 0 and footprint(tq) <= budget_bytes:
            return tq
    # TODO(synk): pad L / masked tail for awkward sequence lengths.
    return L


def _make_kernel(L, TQ, lo_idx, hi_idx, frac, need_quantile, has_mask, exp_dtype):
    n_bisect = 31          # |score| bit patterns lie in [0, 0x7F800000] < 2**31

    def body(lo_ref, hi_ref, mask_ref, q_ref, k_ref, v_ref, o_ref):
        col = jax.lax.broadcasted_iota(jnp.int32, (TQ, L), 1)
        covered = (col >= lo_ref[...]) & (col < hi_ref[...])        # (TQ, L) bool

        # Scores on covered entries, exactly 0 elsewhere (as in the reference).
        s = jax.lax.dot_general(q_ref[...], k_ref[...],
                                dimension_numbers=(((1,), (1,)), ((), ())),
                                preferred_element_type=jnp.float32)
        s = jnp.where(covered, s, 0.0)

        if need_quantile:
            a = jnp.abs(s)
            bits = pltpu.bitcast(a, jnp.int32)

            def count_le(mid):
                # Row-wise count of |s| bit-patterns <= mid (exact: L << 2**24).
                return jnp.sum((bits <= mid).astype(jnp.float32),
                               axis=-1, keepdims=True)

            def bisect_step(_, carry):
                # Bit patterns of non-negative f32 are monotone in value, so an
                # integer bisection finds the exact order statistic in 31 steps.
                lo, hi = carry
                mid = lo + (hi - lo) // 2
                take = count_le(mid) >= jnp.float32(lo_idx + 1)
                return jnp.where(take, lo, mid + 1), jnp.where(take, mid, hi)

            lo0 = jnp.zeros((TQ, 1), jnp.int32)
            hi0 = jnp.full((TQ, 1), _POS_INF_BITS, jnp.int32)
            lo_bits, _ = jax.lax.fori_loop(0, n_bisect, bisect_step, (lo0, hi0))
            v_lo = pltpu.bitcast(lo_bits, jnp.float32)              # a_sorted[lo_idx]

            if hi_idx == lo_idx:
                thresh = v_lo
            else:
                # a_sorted[hi_idx] without a second bisection: equal to v_lo if
                # at least hi_idx+1 elements are <= v_lo, otherwise the smallest
                # element strictly greater than v_lo.
                cnt_lo = count_le(lo_bits)
                gt_min = jnp.min(jnp.where(a > v_lo, a, jnp.inf),
                                 axis=-1, keepdims=True)
                v_hi = jnp.where(cnt_lo >= jnp.float32(hi_idx + 1), v_lo, gt_min)
                thresh = v_lo + jnp.float32(frac) * (v_hi - v_lo)

            s = jnp.where(a < thresh, _NEG_INF, s)
        # else: every row has >= hi_idx+1 structural zeros -> threshold == 0 and
        # the prune (|s| < 0) is a no-op; the entire quantile block is elided.

        if has_mask:
            s = jnp.where(mask_ref[...] != 0, _NEG_INF, s)

        # Softmax over the key axis (guarded: an all -inf row yields 0, not NaN).
        smax = jnp.max(s, axis=-1, keepdims=True)
        smax = jnp.where(smax == _NEG_INF, 0.0, smax)
        e = jnp.exp((s - smax).astype(exp_dtype))       # bf16 EUP on v6e/v7x
        denom = jnp.sum(e.astype(jnp.float32), axis=-1, keepdims=True)
        denom = jnp.where(denom == 0.0, 1.0, denom)
        p = e * pl.reciprocal(denom, approx=True).astype(exp_dtype)

        out = jnp.dot(p.astype(v_ref.dtype), v_ref[...],
                      preferred_element_type=jnp.float32)
        o_ref[...] = out.astype(o_ref.dtype)

    if has_mask:
        def kernel(lo_ref, hi_ref, mask_ref, q_ref, k_ref, v_ref, o_ref):
            body(lo_ref, hi_ref, mask_ref, q_ref, k_ref, v_ref, o_ref)
    else:
        def kernel(lo_ref, hi_ref, q_ref, k_ref, v_ref, o_ref):
            body(lo_ref, hi_ref, None, q_ref, k_ref, v_ref, o_ref)
    return kernel


class ProbAttentionPallas:
    """Pallas port of ProbAttention.forward (eval mode: dropout == identity)."""

    def __init__(self, mask_flag=True, patch_size=5, num_patches=20,
                 attention_dropout=0.1, output_attention=False, prune_rate=0.1,
                 seed=0):
        self.mask_flag = mask_flag
        self.patch_size = patch_size
        self.num_patches = num_patches
        self.prune_rate = prune_rate
        self.output_attention = output_attention
        self.seed = seed
        # TODO(synk): nn.Dropout(attention_dropout) is stochastic in train mode;
        # treated as identity here (eval-mode semantics).
        self.attention_dropout = attention_dropout

    # -------- host-side coverage (mirrors the python random.randint loop) ----
    def _patch_starts(self, L):
        # TODO(synk): PyTorch samples from the *global* random state at call
        # time; here a deterministic per-module seed is used instead.
        rng = random.Random(self.seed)
        return [rng.randint(0, L - self.patch_size) for _ in range(self.num_patches)]

    def coverage_matrix(self, L):
        """Dense (L, L) 0/1 coverage (for reference implementations / tests)."""
        cov = np.zeros((L, L), np.float32)
        for s in self._patch_starts(L):
            cov[s:s + self.patch_size, s:s + self.patch_size] = 1.0
        return jnp.asarray(cov)

    def _coverage_bounds(self, L):
        """Per-row covered-column interval [lo, hi).  All patches covering a
        given row have starts within patch_size of each other, so their column
        ranges overlap and the union is a single interval."""
        lo = np.full((L,), L, np.int32)
        hi = np.zeros((L,), np.int32)
        for s in self._patch_starts(L):
            e = s + self.patch_size
            lo[s:e] = np.minimum(lo[s:e], s)
            hi[s:e] = np.maximum(hi[s:e], e)
        return lo, hi

    def __call__(self, queries, keys, values, attn_mask=None):
        B, L, H, E = queries.shape
        D = values.shape[-1]

        # torch.quantile 'linear' interpolation parameters (static).
        pos = self.prune_rate * (L - 1)
        lo_idx = int(math.floor(pos))
        hi_idx = int(math.ceil(pos))
        frac = pos - lo_idx

        lo_np, hi_np = self._coverage_bounds(L)
        covered = np.maximum(hi_np - lo_np, 0)
        # If every row has >= hi_idx+1 uncovered (exactly-zero) |scores|, the
        # quantile threshold is exactly 0 and pruning is a no-op.
        need_quantile = not bool(np.all((L - covered) >= (hi_idx + 1)))

        vmem_limit, vmem_budget, exp_dtype = _tpu_tuning()

        has_mask = bool(self.mask_flag and attn_mask is not None)
        mask_in = None
        mask_shared_2d = True
        if has_mask:
            m = jnp.asarray(attn_mask)
            if m.ndim == 3 and m.shape[0] > 1:
                m = m[:, None]                                     # (B,1,L,L)
            if m.ndim == 4 and (m.shape[0] > 1 or m.shape[1] > 1):
                mask_in = (jnp.broadcast_to(m, (B, H, L, L)) != 0).astype(jnp.int8)
                mask_shared_2d = False
            else:
                m2 = jnp.reshape(m, m.shape[-2:])
                mask_in = (jnp.broadcast_to(m2, (L, L)) != 0).astype(jnp.int8)

        TQ = _pick_tq(L, E, D, has_mask, need_quantile, vmem_budget)
        nq = L // TQ

        # (B, L, H, E) -> (B, H, L, E): one XLA transpose per operand; puts the
        # head axis on the grid so only one head's temporaries are live.
        q = jnp.transpose(queries, (0, 2, 1, 3)).astype(jnp.bfloat16)
        k = jnp.transpose(keys, (0, 2, 1, 3)).astype(jnp.bfloat16)
        v = jnp.transpose(values, (0, 2, 1, 3)).astype(jnp.bfloat16)
        lo = jnp.asarray(lo_np).reshape(L, 1)
        hi = jnp.asarray(hi_np).reshape(L, 1)

        kernel = _make_kernel(L, TQ, lo_idx, hi_idx, frac, need_quantile,
                              has_mask, exp_dtype)

        in_specs = [
            pl.BlockSpec((TQ, 1), lambda b, h, i: (i, 0)),   # row interval lo
            pl.BlockSpec((TQ, 1), lambda b, h, i: (i, 0)),   # row interval hi
        ]
        inputs = [lo, hi]
        if has_mask:
            if mask_shared_2d:
                in_specs.append(pl.BlockSpec((TQ, L), lambda b, h, i: (i, 0)))
            else:
                in_specs.append(pl.BlockSpec((None, None, TQ, L),
                                             lambda b, h, i: (b, h, i, 0)))
            inputs.append(mask_in)
        in_specs += [
            pl.BlockSpec((None, None, TQ, E), lambda b, h, i: (b, h, i, 0)),  # q tile
            # K / V block indices ignore i: fetched once per (batch, head) and
            # kept resident across the whole query-tile sweep.
            pl.BlockSpec((None, None, L, E), lambda b, h, i: (b, h, 0, 0)),   # keys
            pl.BlockSpec((None, None, L, D), lambda b, h, i: (b, h, 0, 0)),   # values
        ]
        inputs += [q, k, v]

        out = pl.pallas_call(
            kernel,
            out_shape=jax.ShapeDtypeStruct((B, H, L, D), jnp.float32),
            grid=(B, H, nq),
            in_specs=in_specs,
            out_specs=pl.BlockSpec((None, None, TQ, D),
                                   lambda b, h, i: (b, h, i, 0)),
            compiler_params=pltpu.CompilerParams(
                dimension_semantics=("parallel", "parallel", "parallel"),
                vmem_limit_bytes=vmem_limit),
        )(*inputs)

        V = jnp.transpose(out, (0, 2, 1, 3))          # back to (B, L, H, D)
        # TODO(synk): output_attention=True would require materializing the
        # (B, H, L, L) attention matrix in HBM; not implemented.
        return V, None


def _reference(queries, keys, values, cov, prune_rate, attn_mask=None):
    """Pure-JAX reference mirroring the PyTorch forward (eval-mode dropout)."""
    scores = jnp.einsum('blhe,bshe->bhls', queries, keys,
                        precision=jax.lax.Precision.HIGHEST)
    scores = scores * cov[None, None]
    a = jnp.abs(scores)
    thr = jnp.quantile(a, prune_rate, axis=-1, keepdims=True, method='linear')
    scores = jnp.where(a < thr, float('-inf'), scores)
    if attn_mask is not None:
        scores = jnp.where(attn_mask, float('-inf'), scores)
    A = jax.nn.softmax(scores, axis=-1)
    return jnp.einsum('bhls,bshd->blhd', A, values,
                      precision=jax.lax.Precision.HIGHEST)


if __name__ == "__main__":
    B, L, H, E, D = 2, 16, 2, 8, 8
    key = jax.random.PRNGKey(0)
    kq, kk, kv = jax.random.split(key, 3)
    queries = jax.random.normal(kq, (B, L, H, E), jnp.float32)
    keys_ = jax.random.normal(kk, (B, L, H, E), jnp.float32)
    values = jax.random.normal(kv, (B, L, H, D), jnp.float32)

    # The reference consumes the same bf16-rounded inputs the kernel sees, so
    # the discrete pruning decisions match; remaining diffs are matmul / exp /
    # approximate-reciprocal rounding.
    qb = queries.astype(jnp.bfloat16).astype(jnp.float32)
    kb = keys_.astype(jnp.bfloat16).astype(jnp.float32)
    vb = values.astype(jnp.bfloat16).astype(jnp.float32)

    def check(attn, attn_mask=None):
        V, A = attn(queries, keys_, values, attn_mask=attn_mask)
        V = jax.block_until_ready(V)
        assert V.shape == (B, L, H, D) and A is None
        mref = None if attn_mask is None else jnp.asarray(attn_mask)
        V_ref = _reference(qb, kb, vb, attn.coverage_matrix(L), attn.prune_rate,
                           attn_mask=mref)
        np.testing.assert_allclose(np.asarray(V), np.asarray(V_ref),
                                   rtol=2e-2, atol=2e-2)

    # 1) module defaults (mixed coverage).
    check(ProbAttentionPallas(patch_size=5, num_patches=20, prune_rate=0.1, seed=0))
    # 2) full coverage -> guarantees the in-kernel quantile / bisection path.
    check(ProbAttentionPallas(patch_size=L, num_patches=4, prune_rate=0.1, seed=1))
    # 3) sparse coverage (threshold structurally 0) + shared causal mask.
    causal = jnp.asarray(np.triu(np.ones((L, L), dtype=bool), k=1))
    check(ProbAttentionPallas(patch_size=3, num_patches=2, prune_rate=0.1, seed=2),
          attn_mask=causal)

    print("KERNEL_OK")
</pallas_src>

<mosaic_0001>
module attributes {stable_mosaic.version = 11 : i64} {
  func.func @kernel(%arg0: i32, %arg1: i32, %arg2: i32, %arg3: memref<16x1xi32, #tpu.memory_space<vmem>>, %arg4: memref<16x1xi32, #tpu.memory_space<vmem>>, %arg5: memref<1x1x16x8xbf16, #tpu.memory_space<vmem>>, %arg6: memref<1x1x16x8xbf16, #tpu.memory_space<vmem>>, %arg7: memref<1x1x16x8xbf16, #tpu.memory_space<vmem>>, %arg8: memref<1x1x16x8xf32, #tpu.memory_space<vmem>>) attributes {dimension_semantics = [#tpu.dimension_semantics<parallel>, #tpu.dimension_semantics<parallel>, #tpu.dimension_semantics<parallel>], iteration_bounds = array<i64: 2, 2, 1>, scalar_prefetch = 0 : i64, scratch_operands = 0 : i64, tpu.core_type = #tpu.core_type<tc>, window_params = [{transform_indices = @transform_0, window_bounds = array<i64: 16, 1>}, {transform_indices = @transform_1, window_bounds = array<i64: 16, 1>}, {transform_indices = @transform_2, window_bounds = array<i64: 1, 1, 16, 8>}, {transform_indices = @transform_3, window_bounds = array<i64: 1, 1, 16, 8>}, {transform_indices = @transform_4, window_bounds = array<i64: 1, 1, 16, 8>}, {transform_indices = @transform_5, window_bounds = array<i64: 1, 1, 16, 8>}]} {
    %0 = tpu.iota {dimensions = array<i32: 1>} : vector<16x16xi32>
    %c0 = arith.constant 0 : index
    %c0_0 = arith.constant 0 : index
    %1 = vector.load %arg3[%c0, %c0_0] : memref<16x1xi32, #tpu.memory_space<vmem>>, vector<16x1xi32>
    %2 = vector.broadcast %1 : vector<16x1xi32> to vector<16x16xi32>
    %3 = arith.cmpi sge, %0, %2 : vector<16x16xi32>
    %c0_1 = arith.constant 0 : index
    %c0_2 = arith.constant 0 : index
    %4 = vector.load %arg4[%c0_1, %c0_2] : memref<16x1xi32, #tpu.memory_space<vmem>>, vector<16x1xi32>
    %5 = vector.broadcast %4 : vector<16x1xi32> to vector<16x16xi32>
    %6 = arith.cmpi slt, %0, %5 : vector<16x16xi32>
    %7 = arith.andi %3, %6 : vector<16x16xi1>
    %c0_3 = arith.constant 0 : index
    %c0_4 = arith.constant 0 : index
    %c0_5 = arith.constant 0 : index
    %c0_6 = arith.constant 0 : index
    %8 = vector.load %arg5[%c0_3, %c0_4, %c0_5, %c0_6] : memref<1x1x16x8xbf16, #tpu.memory_space<vmem>>, vector<1x1x16x8xbf16>
    %9 = vector.shape_cast %8 : vector<1x1x16x8xbf16> to vector<16x8xbf16>
    %c0_7 = arith.constant 0 : index
    %c0_8 = arith.constant 0 : index
    %c0_9 = arith.constant 0 : index
    %c0_10 = arith.constant 0 : index
    %10 = vector.load %arg6[%c0_7, %c0_8, %c0_9, %c0_10] : memref<1x1x16x8xbf16, #tpu.memory_space<vmem>>, vector<1x1x16x8xbf16>
    %11 = vector.shape_cast %10 : vector<1x1x16x8xbf16> to vector<16x8xbf16>
    %cst = arith.constant dense<0.000000e+00> : vector<16x16xf32>
    %12 = tpu.matmul %9, %11, %cst {dimension_numbers = #tpu.dot_dimension_numbers<[1], [1], [0], [0], [0, 0, 1, 0], [], []>} : vector<16x8xbf16>, vector<16x8xbf16>, vector<16x16xf32> -> vector<16x16xf32>
    %cst_11 = arith.constant 0.000000e+00 : f32
    %13 = vector.broadcast %cst_11 : f32 to vector<16x16xf32>
    %14 = arith.select %7, %12, %13 : vector<16x16xi1>, vector<16x16xf32>
    %cst_12 = arith.constant dense<0xFF800000> : vector<16xf32>
    %15 = vector.multi_reduction <maximumf>, %14, %cst_12 [1] : vector<16x16xf32> to vector<16xf32>
    %16 = vector.shape_cast %15 : vector<16xf32> to vector<16x1xf32>
    %cst_13 = arith.constant 0xFF800000 : f32
    %17 = vector.broadcast %cst_13 : f32 to vector<16x1xf32>
    %18 = arith.cmpf oeq, %16, %17 : vector<16x1xf32>
    %cst_14 = arith.constant 0.000000e+00 : f32
    %19 = vector.broadcast %cst_14 : f32 to vector<16x1xf32>
    %20 = arith.select %18, %19, %16 : vector<16x1xi1>, vector<16x1xf32>
    %21 = vector.broadcast %20 : vector<16x1xf32> to vector<16x16xf32>
    %22 = arith.subf %14, %21 : vector<16x16xf32>
    %23 = arith.truncf %22 : vector<16x16xf32> to vector<16x16xbf16>
    %24 = math.exp %23 : vector<16x16xbf16>
    %25 = arith.extf %24 : vector<16x16xbf16> to vector<16x16xf32>
    %cst_15 = arith.constant dense<0.000000e+00> : vector<16xf32>
    %26 = vector.multi_reduction <add>, %25, %cst_15 [1] : vector<16x16xf32> to vector<16xf32>
    %27 = vector.shape_cast %26 : vector<16xf32> to vector<16x1xf32>
    %cst_16 = arith.constant 0.000000e+00 : f32
    %28 = vector.broadcast %cst_16 : f32 to vector<16x1xf32>
    %29 = arith.cmpf oeq, %27, %28 : vector<16x1xf32>
    %cst_17 = arith.constant 1.000000e+00 : f32
    %30 = vector.broadcast %cst_17 : f32 to vector<16x1xf32>
    %31 = arith.select %29, %30, %27 : vector<16x1xi1>, vector<16x1xf32>
    %32 = tpu.reciprocal %31 {approx = true} : vector<16x1xf32> -> vector<16x1xf32>
    %33 = arith.truncf %32 : vector<16x1xf32> to vector<16x1xbf16>
    %34 = vector.broadcast %33 : vector<16x1xbf16> to vector<16x16xbf16>
    %35 = arith.mulf %24, %34 : vector<16x16xbf16>
    %c0_18 = arith.constant 0 : index
    %c0_19 = arith.constant 0 : index
    %c0_20 = arith.constant 0 : index
    %c0_21 = arith.constant 0 : index
    %36 = vector.load %arg7[%c0_18, %c0_19, %c0_20, %c0_21] : memref<1x1x16x8xbf16, #tpu.memory_space<vmem>>, vector<1x1x16x8xbf16>
    %37 = vector.shape_cast %36 : vector<1x1x16x8xbf16> to vector<16x8xbf16>
    %cst_22 = arith.constant dense<0.000000e+00> : vector<16x8xf32>
    %38 = tpu.matmul %35, %37, %cst_22 {dimension_numbers = #tpu.dot_dimension_numbers<[1], [0], [0], [1], [0, 0, 1, 1], [], []>} : vector<16x16xbf16>, vector<16x8xbf16>, vector<16x8xf32> -> vector<16x8xf32>
    %c0_23 = arith.constant 0 : index
    %c0_24 = arith.constant 0 : index
    %c0_25 = arith.constant 0 : index
    %c0_26 = arith.constant 0 : index
    %39 = vector.load %arg8[%c0_23, %c0_24, %c0_25, %c0_26] : memref<1x1x16x8xf32, #tpu.memory_space<vmem>>, vector<1x1x16x8xf32>
    %40 = vector.shape_cast %39 : vector<1x1x16x8xf32> to vector<16x8xf32>
    %41 = vector.shape_cast %38 : vector<16x8xf32> to vector<1x1x16x8xf32>
    tpu.vector_store %arg8[%c0_23, %c0_24, %c0_25, %c0_26], %41 {strides = array<i32>} : memref<1x1x16x8xf32, #tpu.memory_space<vmem>>, vector<1x1x16x8xf32>,
    return
  }
  func.func @transform_0(%arg0: i32, %arg1: i32, %arg2: i32) -> (i32, i32) {
    %c0_i32 = arith.constant 0 : i32
    %c0_i32_0 = arith.constant 0 : i32
    return %arg2, %c0_i32 : i32, i32
  }
  func.func @transform_1(%arg0: i32, %arg1: i32, %arg2: i32) -> (i32, i32) {
    %c0_i32 = arith.constant 0 : i32
    %c0_i32_0 = arith.constant 0 : i32
    return %arg2, %c0_i32 : i32, i32
  }
  func.func @transform_2(%arg0: i32, %arg1: i32, %arg2: i32) -> (i32, i32, i32, i32) {
    %c0_i32 = arith.constant 0 : i32
    %c0_i32_0 = arith.constant 0 : i32
    return %arg0, %arg1, %arg2, %c0_i32 : i32, i32, i32, i32
  }
  func.func @transform_3(%arg0: i32, %arg1: i32, %arg2: i32) -> (i32, i32, i32, i32) {
    %c0_i32 = arith.constant 0 : i32
    %c0_i32_0 = arith.constant 0 : i32
    %c0_i32_1 = arith.constant 0 : i32
    return %arg0, %arg1, %c0_i32, %c0_i32_0 : i32, i32, i32, i32
  }
  func.func @transform_4(%arg0: i32, %arg1: i32, %arg2: i32) -> (i32, i32, i32, i32) {
    %c0_i32 = arith.constant 0 : i32
    %c0_i32_0 = arith.constant 0 : i32
    %c0_i32_1 = arith.constant 0 : i32
    return %arg0, %arg1, %c0_i32, %c0_i32_0 : i32, i32, i32, i32
  }
  func.func @transform_5(%arg0: i32, %arg1: i32, %arg2: i32) -> (i32, i32, i32, i32) {
    %c0_i32 = arith.constant 0 : i32
    %c0_i32_0 = arith.constant 0 : i32
    return %arg0, %arg1, %arg2, %c0_i32 : i32, i32, i32, i32
  }
}

</mosaic_0001>

<bundles_post_ra>
// kernel: tpu_custom_call.1
= control target key start
LH: loop header
LB: loop body
LE: loop exit
PB: predicated region body
PF: predicated region fallthrough
CT: control target
= control target key end

     0   :  { %s939_s18 = smov 0   ;;  %s941_s19 = smov 0   ;;  %s1026_s0 = inlined_call_operand.vmem [shape: s32[16,1], index: 0, kind: input, shape index: {}]   ;;  %s1027_s1 = inlined_call_operand.vmem [shape: s32[16,1], index: 1, kind: input, shape index: {}]   ;;  %s1028_s2 = inlined_call_operand.vmem [shape: bf16[2,2,16,8], index: 2, kind: input, shape index: {}]   ;;  %s1029_s3 = inlined_call_operand.vmem [shape: bf16[2,2,16,8], index: 3, kind: input, shape index: {}]   ;;  %s1030_s4 = inlined_call_operand.vmem [shape: bf16[2,2,16,8], index: 4, kind: input, shape index: {}]   ;;  %s1031_s5 = inlined_call_operand.vmem [shape: f32[2,2,16,8], index: 5, kind: output, shape index: {}]  }
   0x1   :  { %s943_s20 = smov 0   ;;  %s945_s21 = smov 0  }
   0x2   :  { %s947_s22 = smov 0  }
   0x3 LB: > { %s30_s23 = sadd.s32 1, %s896_s20  ;;  %s34_s24 = sadd.s32 1, %s900_s21  ;;  %s904_s22 = sphi %s947_s22, %s15_s22   ;;  %s900_s21 = sphi %s945_s21, %s1035_s21   ;;  %s896_s20 = sphi %s943_s20, %s1034_s20   ;;  %s892_s19 = sphi %s941_s19, %s1033_s19   ;;  %s888_s18 = sphi %s939_s18, %s1032_s18  }
   0x4   : > { %p32_p0 = scmp.ge.s32.totalorder %s30_s23, 2  ;;  %p776_p1 = scmp.ge.s32.totalorder %s904_s22, 1 }
   0x5   : > { %p277_p2 = scmp.lt.s32.totalorder %s904_s22, 5 }
   0x6   : > { %s1037_s23 = smov (%p32_p0, %s30_s23), 0  ;;  %s1039_s24 = smov (!%p32_p0, %s34_s24), %s900_s21 }
   0x7   : > { %p278_p3 = pnand %p776_p1, %p277_p2  ;;  %p36_p4 = scmp.ge.s32.totalorder %s1039_s24, 2 }
   0x8   : > { %p362_p5 = scmp.lt.s32.totalorder (!%p278_p3), %s892_s19, 1  ;;  %p364_p6 = scmp.lt.s32.totalorder (!%p278_p3), %s888_s18, 1 }
   0x9   : > { %s1041_s24 = smov (%p36_p4, %s1039_s24), 0  ;;  %281 = sbr.rel (%p278_p3) target bundleno = 753 (0x2f1), region = 40 }
   0xe   : > { %v906_v0 = vmov 0.0   ;;  %vm907_vm0 = vmmov 0   ;;  %v420_v1 = vld [vmem:[%s1027_s1] sm:$0xff]  ;;  %s1043_s19 = smov (!%p362_p5, %s892_s19), 1  ;;  %v908_v3 = vmov 0   ;;  %s1045_s18 = smov (!%p364_p6, %s888_s18), 1  ;;  %v408_v9 = vlaneseq }
   0xf   : > { %800 = vmatprep.subr.bf16.mxu0 %v906_v0  ;;  %802 = vmatprep.mubr.msk.bf16.mxu0 %vm907_vm0, %v906_v0  ;;  %v410_v2 = vld [vmem:[%s1026_s0] sm:$0xff]  ;;  %s778_s29 = sshll.u32 %s1043_s19, 2  ;;  %v421_v4 = vld [vmem:[%s1027_s1 + $0x8] sm:$0xff]  ;;  %s777_s9 = sshll.u32 %s1045_s18, 1  ;;  %vm446_vm1 = vcmask 64512   ;;  %vm496_vm5 = vcmask 130048  }
  0x10   : > { %856 = vset.pattern.permute.xlu1 %v908_v3  ;;  %855 = vset.pattern.permute.xlu0 %v908_v3  ;;  %v411_v5 = vld [vmem:[%s1026_s0 + $0x8] sm:$0xff]  ;;  %s981_s10 = sadd.s32 %s778_s29, %s777_s9  ;;  %v409_v10 = vand.u32 127, %v408_v9 }
  0x11   : > { %423 = vperm.xlu1 %856, %v420_v1   ;;  %413 = vperm.xlu0 %855, %v410_v2   ;;  %s984_s11 = sshll.u32 %s981_s10, 2  ;;  %s788_s26 = sshll.u32 %s981_s10, 3 }
  0x12   : > { %806 = vmatprep.subr.bf16.mxu1 %v906_v0  ;;  %808 = vmatprep.mubr.msk.bf16.mxu1 %vm907_vm0, %v906_v0  ;;  %s383_s14 = scalar_lea.vmem %s1029_s3, %s984_s11  ;;  %s373_s17 = scalar_lea.vmem %s1028_s2, %s984_s11 }
  0x13   : > { %v857_v6 = vld [vmem:[%s383_s14] sm:$0xff]   ;;  %s392_s25 = scalar_lea.vmem %s1030_s4, %s984_s11  ;;  %s405_s29 = scalar_lea.vmem %s1031_s5, %s788_s26 }
  0x14   : > { %v451_v7 = vsel %vm446_vm1, %v857_v6, 0  ;;  %v858_v8 = vld [vmem:[%s373_s17] sm:$0xff]  }
  0x15   : > { %426 = vperm.xlu1 %856, %v421_v4   ;;  %416 = vperm.xlu0 %855, %v411_v5   ;;  %v859_v36 = vld [vmem:[%s392_s25] sm:$0xff]  }
  0x16   : > { %801 = vmatpush3.bf16.xpose.msra.mxu0 %v451_v7  ;;  %807 = vmatpush3.bf16.msra.mxu1 %v859_v36 }
  0x1d   : > { %803 = vmatmul.mubr.msk.bf16.vlgmr.msra.gmra.mxu0 %vm446_vm1, %v858_v8 }
  0x8c   : > { %v424_v11 = vpop.permute.xlu1 %423  ;;  %v414_v12 = vpop.permute.xlu0 %413 }
  0x8d   : > { %vm428_vm2 = vcmp.lt.s32.totalorder %v409_v10, %v424_v11  ;;  %vm418_vm3 = vcmp.ge.s32.totalorder %v409_v10, %v414_v12 }
  0x8e   : > { %vm430_vm4 = vmand %vm418_vm3, %vm428_vm2 }
  0x90   : > { %v427_v13 = vpop.permute.xlu1 %426  ;;  %v417_v14 = vpop.permute.xlu0 %416 }
  0x91   : > { %vm429_vm6 = vcmp.lt.s32.totalorder %v409_v10, %v427_v13  ;;  %vm419_vm7 = vcmp.ge.s32.totalorder %v409_v10, %v417_v14 }
  0x92   : > { %vm431_vm8 = vmand %vm419_vm7, %vm429_vm6 }
  0xdd   : > { %v487_v15 = vpop.f32.mrf.mxu0 }
  0xde   : > { %v494_v16 = vsel %vm430_vm4, %v487_v15, 0.0 }
  0xdf   : > { %v804_v17 = vpop.f32.mrf.mxu0  ;;  %v497_v18 = vsel %vm496_vm5, %v494_v16, -inf }
  0xe0   : > { %498 = vmax.xlane.f32.xlu0 %v497_v18 }
  0xe1   : > { %v490_v19 = vpop.f32.mrf.mxu0 }
  0xe2   : > { %v495_v20 = vsel %vm431_vm8, %v490_v19, 0.0 }
  0xe3   : > { %v805_v21 = vpop.f32.mrf.mxu0  ;;  %v500_v22 = vsel %vm496_vm5, %v495_v20, -inf }
  0xe4   : > { %501 = vmax.xlane.f32.xlu1 %v500_v22 }
 0x169   : > { %v499_v23 = vpop.xlane.xlu0 %498 }
 0x16a   : > { %vm503_vm9 = vcmp.eq.f32.partialorder %v499_v23, -inf }
 0x16b   : > { %v505_v24 = vsel %vm503_vm9, 0.0, %v499_v23 }
 0x16c   : > { %v507_v27 = vsub.f32 %v494_v16, %v505_v24 }
 0x16d   : > { %v502_v25 = vpop.xlane.xlu1 %501 }
 0x16e   : > { %vm504_vm10 = vcmp.eq.f32.partialorder %v502_v25, -inf }
 0x16f   : > { %v506_v26 = vsel %vm504_vm10, 0.0, %v502_v25 }
 0x170   : > { %v508_v28 = vsub.f32 %v495_v20, %v506_v26 }
 0x172   : > { %v509_v29 = vpack.c.bf16 %v508_v28, %v507_v27 }
 0x174   : > { %v511_v30 = vmul.bf16 1069105081, %v509_v29 }
 0x176   : > { %860 = vpow.bf16 %v511_v30 }
 0x184   : > { %v861_v31 = vpop.eup %860 }
 0x185   : > { %v513_v32 = vunpack.c.l.bf16 %v861_v31  ;;  %v514_v34 = vunpack.c.h.bf16 %v861_v31 }
 0x187   : > { %v515_v33 = vsel %vm496_vm5, %v513_v32, 0.0  ;;  %v518_v35 = vsel %vm496_vm5, %v514_v34, 0.0 }
 0x188   : > { %516 = vadd.xlane.f32.xlu0 %v515_v33 }
 0x18c   : > { %519 = vadd.xlane.f32.xlu0 %v518_v35 }
 0x211   : > { %v517_v37 = vpop.xlane.xlu0 %516 }
 0x212   : > { %vm521_vm11 = vcmp.eq.f32.partialorder %v517_v37, 0.0 }
 0x213   : > { %v523_v38 = vsel %vm521_vm11, 1.0, %v517_v37 }
 0x214   : > { %862 = vrcp.f32 %v523_v38 }
 0x215   : > { %v520_v39 = vpop.xlane.xlu0 %519 }
 0x216   : > { %vm522_vm12 = vcmp.eq.f32.partialorder %v520_v39, 0.0 }
 0x217   : > { %v524_v40 = vsel %vm522_vm12, 1.0, %v520_v39 }
 0x218   : > { %864 = vrcp.f32 %v524_v40 }
 0x221   : > { %v863_v41 = vpop.eup %862 }
 0x225   : > { %v865_v42 = vpop.eup %864 }
 0x226   : > { %v527_v43 = vpack.c.bf16 %v865_v42, %v863_v41 }
 0x228   : > { %v528_v44 = vmul.bf16 %v861_v31, %v527_v43 }
 0x22a   : > { %809 = vmatmul.mubr.msk.bf16.vlgmr.msra.gmra.mxu1 %vm496_vm5, %v528_v44 }
 0x2ea   : > { %v574_v45 = vpop.f32.mrf.mxu1 }
 0x2eb   : > { %581 = vst.msk [vmem:[%s405_s29] sm:$0xff] %vm446_vm1, %v574_v45 }
 0x2ec   : > { %v810_v46 = vpop.f32.mrf.mxu1 }
 0x2ee   : > { %v577_v47 = vpop.f32.mrf.mxu1 }
 0x2ef   : > { %582 = vst.msk [vmem:[%s405_s29 + $0x8] sm:$0xff] %vm446_vm1, %v577_v47 }
 0x2f0   : > { %v811_v48 = vpop.f32.mrf.mxu1 }
 0x2f1 PF: > { %s15_s22 = sadd.s32 1, %s904_s22   ;;  %s1032_s18 = smov %s896_s20 }
 0x2f2   : > { %p12_p7 = scmp.ge.s32.totalorder %s15_s22, 6   ;;  %s1033_s19 = smov %s900_s21 }
 0x2f3   : > { %s1034_s20 = smov %s1037_s23  ;;  %s1035_s21 = smov %s1041_s24 }
 0x2f4   :  { %14 = sbr.rel (!%p12_p7) target bundleno = 3 (0x3), region = 82 }

</bundles_post_ra>
